<compile_context>
chip_gen: v6e
topology: v6e:2x2x1
jax: 0.10.0
libtpu: 0.0.40
codegen_flags: <defaults>
</compile_context>

<pallas_src>
import jax
import jax.numpy as jnp
from jax.experimental import pallas as pl
from jax.experimental.pallas import tpu as pltpu

# ---- model dims -------------------------------------------------------------
_N_FEATURE = 4
_N_HIDDEN = 20
_N_OUT = 3

# padded dims for the transposed (hidden-on-sublanes) layout
_H_PAD = 32            # hidden 20 -> 32 sublanes
_O_PAD = 8             # output 3 -> 8 sublanes (f32 sublane tile)

# ---- packed parameter slab layout: (rows x 32 lanes), zero padded ----------
_SLAB_LANES = 32
_R_W1T = 0             # rows   0..31 : w1^T (20 x 4 real) in lanes 0..3
_R_B1 = 32             # rows  32..63 : b1   (20 real)     in lane 0
_R_W2T = 64            # rows  64..95 : w2^T (20 x 20 real)
_R_B2 = 96             # rows  96..127: b2                 in lane 0
_R_W3T = 128           # rows 128..135: w3^T (3 x 20 real)
_R_B3 = 136            # rows 136..143: b3                 in lane 0
_SLAB_ROWS = 144       # multiple of 8


def _net_kernel(xt_ref, p_ref, o_ref):
    f32 = jnp.float32
    # NOTE: for a partial last batch tile the out-of-range columns of xt hold
    # undefined data.  All compute below is column-local (the batch/lane axis
    # is never contracted or reduced over), and the out-of-range output
    # columns are masked on store, so any Inf/NaN there never escapes.
    xt = xt_ref[...]                                          # (4, TB) bf16

    # hidden1^T = w1^T @ x^T + b1 ; ReLU          -> (32, TB)
    w1t = p_ref[_R_W1T:_R_W1T + _H_PAD, 0:_N_FEATURE]         # (32, 4) bf16
    b1 = p_ref[_R_B1:_R_B1 + _H_PAD, 0:1].astype(f32)         # (32, 1)
    h1 = jnp.dot(w1t, xt, preferred_element_type=f32) + b1
    h1 = jnp.maximum(h1, 0.0).astype(jnp.bfloat16)

    # hidden2^T = w2^T @ h1^T + b2 ; ReLU         -> (32, TB)
    w2t = p_ref[_R_W2T:_R_W2T + _H_PAD, :]                    # (32, 32)
    b2 = p_ref[_R_B2:_R_B2 + _H_PAD, 0:1].astype(f32)
    h2 = jnp.dot(w2t, h1, preferred_element_type=f32) + b2
    h2 = jnp.maximum(h2, 0.0).astype(jnp.bfloat16)

    # logits^T = w3^T @ h2^T + b3                 -> (8, TB), rows 3..7 padding
    w3t = p_ref[_R_W3T:_R_W3T + _O_PAD, :]                    # (8, 32)
    b3 = p_ref[_R_B3:_R_B3 + _O_PAD, 0:1].astype(f32)
    logits = jnp.dot(w3t, h2, preferred_element_type=f32) + b3

    # class-row validity mask (padding class rows must not contaminate sums)
    row = jax.lax.broadcasted_iota(jnp.int32, logits.shape, 0)
    valid = row < _N_OUT

    # softmax #1 (forward()): over the class (sublane) axis
    m = jnp.max(jnp.where(valid, logits, -jnp.inf), axis=0, keepdims=True)
    e = jnp.where(valid, jnp.exp(logits - m), 0.0)
    s = jnp.sum(e, axis=0, keepdims=True)
    y = e * pl.reciprocal(s, approx=True)        # EUP vrcp, frees VALU slot

    # softmax #2 (test()): inputs are in (0,1], exp cannot overflow -> no max
    e2 = jnp.where(valid, jnp.exp(y), 0.0)
    s2 = jnp.sum(e2, axis=0, keepdims=True)
    o_ref[...] = (e2 / s2).astype(o_ref.dtype)   # exact divide: rows sum ~1


def pack_params(params, dtype=jnp.bfloat16):
    """Pack the 6 small params (transposed) into one zero-padded slab."""
    w1, b1, w2, b2, w3, b3 = params              # w: (in, out), b: (1, out)
    slab = jnp.zeros((_SLAB_ROWS, _SLAB_LANES), jnp.float32)
    slab = slab.at[_R_W1T:_R_W1T + _N_HIDDEN, :_N_FEATURE].set(w1.T)
    slab = slab.at[_R_B1:_R_B1 + _N_HIDDEN, 0].set(b1.reshape(-1))
    slab = slab.at[_R_W2T:_R_W2T + _N_HIDDEN, :_N_HIDDEN].set(w2.T)
    slab = slab.at[_R_B2:_R_B2 + _N_HIDDEN, 0].set(b2.reshape(-1))
    slab = slab.at[_R_W3T:_R_W3T + _N_OUT, :_N_HIDDEN].set(w3.T)
    slab = slab.at[_R_B3:_R_B3 + _N_OUT, 0].set(b3.reshape(-1))
    return slab.astype(dtype)


def _round_up(n, m):
    return ((n + m - 1) // m) * m


def net_test(x, params, *, tb=8192):
    """Runs NET.test(x): forward (2 linears+relu, linear, softmax) + softmax."""
    B = x.shape[0]
    slab = pack_params(params)
    # cast fuses with the transpose into one XLA pass; batch lands on lanes
    xt = x.astype(jnp.bfloat16).T                # (4, B)

    tb = max(128, _round_up(tb, 128))
    TB = _round_up(B, 128)                       # one tile covers everything
    if B >= 256:                                 # keep grid >= 2 for v7x megacore
        TB = min(TB, _round_up(-(-B // 2), 128))
    TB = min(TB, tb)
    grid = (pl.cdiv(B, TB),)

    cost = pl.CostEstimate(
        flops=2 * B * (_N_FEATURE * _N_HIDDEN
                       + _N_HIDDEN * _N_HIDDEN
                       + _N_HIDDEN * _N_OUT),
        transcendentals=2 * _N_OUT * B,
        bytes_accessed=(xt.size * xt.dtype.itemsize
                        + slab.size * slab.dtype.itemsize
                        + _O_PAD * B * 4),
    )

    out_t = pl.pallas_call(
        _net_kernel,
        out_shape=jax.ShapeDtypeStruct((_O_PAD, B), jnp.float32),
        grid=grid,
        in_specs=[
            pl.BlockSpec((_N_FEATURE, TB), lambda i: (0, i)),        # streamed
            pl.BlockSpec((_SLAB_ROWS, _SLAB_LANES), lambda i: (0, 0)),  # resident
        ],
        out_specs=pl.BlockSpec((_O_PAD, TB), lambda i: (0, i)),      # lane-dense
        compiler_params=pltpu.CompilerParams(
            dimension_semantics=("parallel",),   # megacore split on v7x
            vmem_limit_bytes=32 * 1024 * 1024,   # headroom above v5e's 16 MiB default
        ),
        cost_estimate=cost,
    )(xt, slab)
    return out_t[:_N_OUT, :].T                   # (B, 3)


def init_params(key):
    """Deterministic init mimicking torch.nn.Linear default U[-1/sqrt(in), 1/sqrt(in)].
    Weights stored as (in, out)."""
    def linear(k, fan_in, fan_out):
        kw, kb = jax.random.split(k)
        bound = 1.0 / jnp.sqrt(fan_in)
        w = jax.random.uniform(kw, (fan_in, fan_out), jnp.float32, -bound, bound)
        b = jax.random.uniform(kb, (1, fan_out), jnp.float32, -bound, bound)
        return w, b

    k1, k2, k3 = jax.random.split(key, 3)
    w1, b1 = linear(k1, _N_FEATURE, _N_HIDDEN)
    w2, b2 = linear(k2, _N_HIDDEN, _N_HIDDEN)
    w3, b3 = linear(k3, _N_HIDDEN, _N_OUT)
    return (w1, b1, w2, b2, w3, b3)


def net_test_ref(x, params):
    """Pure-JAX f32 reference of NET.test."""
    w1, b1, w2, b2, w3, b3 = params
    h1 = jnp.maximum(x @ w1 + b1, 0.0)
    h2 = jnp.maximum(h1 @ w2 + b2, 0.0)
    y = jax.nn.softmax(h2 @ w3 + b3, axis=-1)
    return jax.nn.softmax(y, axis=-1)


if __name__ == "__main__":
    key = jax.random.PRNGKey(0)
    kx, kp = jax.random.split(key)
    # small iris-like input: batch=8, n_feature=4
    x = jax.random.uniform(kx, (8, 4), jnp.float32)
    params = init_params(kp)

    out = jax.block_until_ready(net_test(x, params))

    assert out.shape == (8, 3)
    # final softmax uses exact division -> rows sum to 1 tightly
    assert jnp.allclose(jnp.sum(out, axis=-1), 1.0, atol=1e-5)
    # loose match vs f32 reference (bf16 stream + approx reciprocal inside)
    ref = net_test_ref(x, params)
    assert jnp.allclose(out, ref, atol=5e-2)
    print("KERNEL_OK")
</pallas_src>

<mosaic_0001>
module attributes {stable_mosaic.version = 11 : i64} {
  func.func @_net_kernel(%arg0: i32, %arg1: memref<4x128xbf16, #tpu.memory_space<vmem>>, %arg2: memref<144x32xbf16, #tpu.memory_space<vmem>>, %arg3: memref<8x128xf32, #tpu.memory_space<vmem>>) attributes {dimension_semantics = [#tpu.dimension_semantics<parallel>], iteration_bounds = array<i64: 1>, scalar_prefetch = 0 : i64, scratch_operands = 0 : i64, tpu.core_type = #tpu.core_type<tc>, window_params = [{transform_indices = @transform_0, window_bounds = array<i64: 4, 128>}, {pipeline_mode = #tpu.pipeline_mode<synchronous>, transform_indices = @transform_1, window_bounds = array<i64: 144, 32>}, {transform_indices = @transform_2, window_bounds = array<i64: 8, 128>}]} {
    %c0 = arith.constant 0 : index
    %c0_0 = arith.constant 0 : index
    %0 = vector.load %arg1[%c0, %c0_0] : memref<4x128xbf16, #tpu.memory_space<vmem>>, vector<4x128xbf16>
    %c0_1 = arith.constant 0 : index
    %c0_2 = arith.constant 0 : index
    %1 = vector.load %arg2[%c0_1, %c0_2] : memref<144x32xbf16, #tpu.memory_space<vmem>>, vector<32x4xbf16>
    %c32 = arith.constant 32 : index
    %c0_3 = arith.constant 0 : index
    %2 = vector.load %arg2[%c32, %c0_3] : memref<144x32xbf16, #tpu.memory_space<vmem>>, vector<32x1xbf16>
    %3 = arith.extf %2 : vector<32x1xbf16> to vector<32x1xf32>
    %cst = arith.constant dense<0.000000e+00> : vector<32x128xf32>
    %4 = tpu.matmul %1, %0, %cst {dimension_numbers = #tpu.dot_dimension_numbers<[1], [0], [0], [1], [0, 0, 1, 1], [], []>} : vector<32x4xbf16>, vector<4x128xbf16>, vector<32x128xf32> -> vector<32x128xf32>
    %5 = vector.broadcast %3 : vector<32x1xf32> to vector<32x128xf32>
    %6 = arith.addf %4, %5 : vector<32x128xf32>
    %cst_4 = arith.constant 0.000000e+00 : f32
    %7 = vector.broadcast %cst_4 : f32 to vector<32x128xf32>
    %8 = arith.maximumf %6, %7 : vector<32x128xf32>
    %9 = arith.truncf %8 : vector<32x128xf32> to vector<32x128xbf16>
    %c64 = arith.constant 64 : index
    %c0_5 = arith.constant 0 : index
    %10 = vector.load %arg2[%c64, %c0_5] : memref<144x32xbf16, #tpu.memory_space<vmem>>, vector<32x32xbf16>
    %c96 = arith.constant 96 : index
    %c0_6 = arith.constant 0 : index
    %11 = vector.load %arg2[%c96, %c0_6] : memref<144x32xbf16, #tpu.memory_space<vmem>>, vector<32x1xbf16>
    %12 = arith.extf %11 : vector<32x1xbf16> to vector<32x1xf32>
    %cst_7 = arith.constant dense<0.000000e+00> : vector<32x128xf32>
    %13 = tpu.matmul %10, %9, %cst_7 {dimension_numbers = #tpu.dot_dimension_numbers<[1], [0], [0], [1], [0, 0, 1, 1], [], []>} : vector<32x32xbf16>, vector<32x128xbf16>, vector<32x128xf32> -> vector<32x128xf32>
    %14 = vector.broadcast %12 : vector<32x1xf32> to vector<32x128xf32>
    %15 = arith.addf %13, %14 : vector<32x128xf32>
    %cst_8 = arith.constant 0.000000e+00 : f32
    %16 = vector.broadcast %cst_8 : f32 to vector<32x128xf32>
    %17 = arith.maximumf %15, %16 : vector<32x128xf32>
    %18 = arith.truncf %17 : vector<32x128xf32> to vector<32x128xbf16>
    %c128 = arith.constant 128 : index
    %c0_9 = arith.constant 0 : index
    %19 = vector.load %arg2[%c128, %c0_9] : memref<144x32xbf16, #tpu.memory_space<vmem>>, vector<8x32xbf16>
    %c136 = arith.constant 136 : index
    %c0_10 = arith.constant 0 : index
    %20 = vector.load %arg2[%c136, %c0_10] : memref<144x32xbf16, #tpu.memory_space<vmem>>, vector<8x1xbf16>
    %21 = arith.extf %20 : vector<8x1xbf16> to vector<8x1xf32>
    %cst_11 = arith.constant dense<0.000000e+00> : vector<8x128xf32>
    %22 = tpu.matmul %19, %18, %cst_11 {dimension_numbers = #tpu.dot_dimension_numbers<[1], [0], [0], [1], [0, 0, 1, 1], [], []>} : vector<8x32xbf16>, vector<32x128xbf16>, vector<8x128xf32> -> vector<8x128xf32>
    %23 = vector.broadcast %21 : vector<8x1xf32> to vector<8x128xf32>
    %24 = arith.addf %22, %23 : vector<8x128xf32>
    %25 = tpu.iota {dimensions = array<i32: 0>} : vector<8x128xi32>
    %c3_i32 = arith.constant 3 : i32
    %26 = vector.broadcast %c3_i32 : i32 to vector<8x128xi32>
    %27 = arith.cmpi slt, %25, %26 : vector<8x128xi32>
    %cst_12 = arith.constant 0xFF800000 : f32
    %28 = vector.broadcast %cst_12 : f32 to vector<8x128xf32>
    %29 = arith.select %27, %24, %28 : vector<8x128xi1>, vector<8x128xf32>
    %cst_13 = arith.constant dense<0xFF800000> : vector<128xf32>
    %30 = vector.multi_reduction <maximumf>, %29, %cst_13 [0] : vector<8x128xf32> to vector<128xf32>
    %31 = vector.shape_cast %30 : vector<128xf32> to vector<1x128xf32>
    %32 = vector.broadcast %31 : vector<1x128xf32> to vector<8x128xf32>
    %33 = arith.subf %24, %32 : vector<8x128xf32>
    %34 = math.exp %33 : vector<8x128xf32>
    %cst_14 = arith.constant 0.000000e+00 : f32
    %35 = vector.broadcast %cst_14 : f32 to vector<8x128xf32>
    %36 = arith.select %27, %34, %35 : vector<8x128xi1>, vector<8x128xf32>
    %cst_15 = arith.constant dense<0.000000e+00> : vector<128xf32>
    %37 = vector.multi_reduction <add>, %36, %cst_15 [0] : vector<8x128xf32> to vector<128xf32>
    %38 = vector.shape_cast %37 : vector<128xf32> to vector<1x128xf32>
    %39 = tpu.reciprocal %38 {approx = true} : vector<1x128xf32> -> vector<1x128xf32>
    %40 = vector.broadcast %39 : vector<1x128xf32> to vector<8x128xf32>
    %41 = arith.mulf %36, %40 : vector<8x128xf32>
    %42 = math.exp %41 : vector<8x128xf32>
    %cst_16 = arith.constant 0.000000e+00 : f32
    %43 = vector.broadcast %cst_16 : f32 to vector<8x128xf32>
    %44 = arith.select %27, %42, %43 : vector<8x128xi1>, vector<8x128xf32>
    %cst_17 = arith.constant dense<0.000000e+00> : vector<128xf32>
    %45 = vector.multi_reduction <add>, %44, %cst_17 [0] : vector<8x128xf32> to vector<128xf32>
    %46 = vector.shape_cast %45 : vector<128xf32> to vector<1x128xf32>
    %47 = vector.broadcast %46 : vector<1x128xf32> to vector<8x128xf32>
    %48 = arith.divf %44, %47 : vector<8x128xf32>
    %c0_18 = arith.constant 0 : index
    %c0_19 = arith.constant 0 : index
    %49 = vector.load %arg3[%c0_18, %c0_19] : memref<8x128xf32, #tpu.memory_space<vmem>>, vector<8x128xf32>
    tpu.vector_store %arg3[%c0_18, %c0_19], %48 {strides = array<i32>} : memref<8x128xf32, #tpu.memory_space<vmem>>, vector<8x128xf32>,
    return
  }
  func.func @transform_0(%arg0: i32) -> (i32, i32) {
    %c0_i32 = arith.constant 0 : i32
    %c0_i32_0 = arith.constant 0 : i32
    return %c0_i32, %arg0 : i32, i32
  }
  func.func @transform_1(%arg0: i32) -> (i32, i32) {
    %c0_i32 = arith.constant 0 : i32
    %c0_i32_0 = arith.constant 0 : i32
    %c0_i32_1 = arith.constant 0 : i32
    return %c0_i32, %c0_i32_0 : i32, i32
  }
  func.func @transform_2(%arg0: i32) -> (i32, i32) {
    %c0_i32 = arith.constant 0 : i32
    %c0_i32_0 = arith.constant 0 : i32
    return %c0_i32, %arg0 : i32, i32
  }
}

</mosaic_0001>

<bundles_post_ra>
// kernel: tpu_custom_call.1
= control target key start
LH: loop header
LB: loop body
LE: loop exit
PB: predicated region body
PF: predicated region fallthrough
CT: control target
= control target key end

     0   :  { %vm63_vm0 = vcmask 1041408   ;;  %vm56_vm1 = vcmask 31744   ;;  %v455_v5 = vmov 0   ;;  %s516_s0 = inlined_call_operand.vmem [shape: bf16[4,8], index: 0, kind: input, shape index: {}]   ;;  %s517_s1 = inlined_call_operand.vmem [shape: bf16[144,32], index: 1, kind: input, shape index: {}]   ;;  %s518_s2 = inlined_call_operand.hbm [shape: f32[8,8], index: 2, kind: output, shape index: {}]  }
   0x1   :  { %v13_v0 = vld [vmem:[%s516_s0] sm:$0x3]  ;;  %v414_v3 = vld [vmem:[%s517_s1 + $0x8] sm:$0xff]   ;;  %v351_v4 = vld [vmem:[%s517_s1 + $0x18] sm:$0xff]   ;;  %391 = vset.pattern.permute.xlu0 %v455_v5  ;;  %402 = vset.pattern.permute.xlu1 %v455_v5 }
   0x2   :  { %v413_v1 = vld [vmem:[%s517_s1] sm:$0xff]   ;;  %386 = vmatprep.subr.msk.bf16.mxu0 %vm63_vm0, %v13_v0  ;;  %v65_v2 = vsel %vm63_vm0, %v13_v0, 0  ;;  %v340_v6 = vunpack.c.l.bf16 %v351_v4  ;;  %v341_v7 = vunpack.c.h.bf16 %v351_v4  ;;  %v350_v8 = vld [vmem:[%s517_s1 + $0x10] sm:$0xff]  }
   0x3   :  { %365 = vmatpush3.bf16.msra.mxu0 %v65_v2  ;;  %366 = vmatprep.mubr.msk.bf16.mxu0 %vm56_vm1, %v413_v1  ;;  %v336_v9 = vunpack.c.l.bf16 %v350_v8  ;;  %v337_v10 = vunpack.c.h.bf16 %v350_v8 }
   0x4   :  { %v392_v11 = vpack.i.bf16 %v341_v7, %v340_v6 }
   0x6   :  { %367 = vmatmul.mubr.msk.bf16.vlgmr.msra.gmra.mxu0 %vm56_vm1, %v414_v3 }
   0x7   :  { %7 = vsyncpa [#allocation3], 0  ;;  %393 = vperm.xlu0 %391, %v392_v11   ;;  %v397_v12 = vpack.i.bf16 %v337_v10, %v336_v9  ;;  %v227_v13 = vld [vmem:[%s517_s1 + $0x44] sm:$0xf]  ;;  %vm164_vm2 = vcmask 261120   ;;  %v353_v16 = vld [vmem:[%s517_s1 + $0x38] sm:$0xff]   ;;  %v277_v59 = vlaneseq }
   0x8   :  { %v228_v14 = vunpack.c.l.bf16 %v227_v13  ;;  %v415_v15 = vld [vmem:[%s517_s1 + $0x20] sm:$0xff]   ;;  %v352_v17 = vld [vmem:[%s517_s1 + $0x30] sm:$0xff]   ;;  %v348_v18 = vunpack.c.l.bf16 %v353_v16  ;;  %v349_v19 = vunpack.c.h.bf16 %v353_v16  ;;  %v416_v40 = vld [vmem:[%s517_s1 + $0x28] sm:$0xff]   ;;  %v456_v41 = vmov 0.0  }
   0x9   :  { %374 = vmatprep.mubr.msk.bf16.mxu1 %vm164_vm2, %v415_v15  ;;  %v344_v20 = vunpack.c.l.bf16 %v352_v17  ;;  %v345_v21 = vunpack.c.h.bf16 %v352_v17  ;;  %378 = vmatprep.subr.bf16.mxu0 %v456_v41  ;;  %vm457_vm3 = vmmov 0   ;;  %v226_v58 = vld [vmem:[%s517_s1 + $0x40] sm:$0xf]  ;;  %v278_v60 = vshrl.u32 %v277_v59, 7  ;;  %s458_s1 = smov [#allocation2]  }
   0xa   :  { %v403_v22 = vpack.i.bf16 %v349_v19, %v348_v18  ;;  %382 = vmatprep.mubr.msk.bf16.mxu0 %vm457_vm3, %v456_v41  ;;  %s317_s30 = sshll.u32 %s458_s1, 4  ;;  %s318_s30 = int_to_ptr.vmem [resolvable:$true] %s317_s30 }
   0xb   :  { %398 = vperm.xlu0 %391, %v397_v12   ;;  %v408_v23 = vpack.i.bf16 %v345_v21, %v344_v20  ;;  %vm279_vm4 = vcmp.lt.s32.totalorder %v278_v60, 3  ;;  %s433_s3 = scalar_lea.vmem %s318_s30, 128  ;;  %p438_p1 = scmp.lt.s32.totalorder %s318_s30, %s318_s30 }
   0xc   :  { %404 = vperm.xlu1 %402, %v403_v22   ;;  %p434_p0 = scmp.ne.s32.totalorder %s318_s30, %s433_s3  ;;  %p439_p2 = scmp.lt.s32.totalorder %s433_s3, %s433_s3 }
   0xe   :  { %p440_p3 = por %p439_p2, %p438_p1 }
   0xf   :  { %231 = vperm.xlu0 %391, %v228_v14  }
  0x10   :  { %409 = vperm.xlu1 %402, %v408_v23   ;;  %p441_p4 = pnand %p440_p3, %p434_p0 }
  0x82   :  { %v394_v24 = vpop.permute.xlu0 %393 }
  0x86   :  { %v399_v25 = vpop.permute.xlu0 %398 }
  0x87   :  { %v405_v42 = vpop.permute.xlu1 %404 }
  0x8a   :  { %v232_v61 = vpop.permute.xlu0 %231 }
  0x8b   :  { %v410_v43 = vpop.permute.xlu1 %409 }
  0xc6   :  { %v368_v26 = vpop.f32.mrf.mxu0 }
  0xc7   :  { %v425_v28 = vadd.low.f32.bf16 %v368_v26, %v394_v24 }
  0xc8   :  { %v101_v27 = vpop.f32.mrf.mxu0 }
  0xc9   :  { %v426_v30 = vadd.low.f32.bf16 %v101_v27, %v399_v25  ;;  %v118_v33 = vmax.f32 %v425_v28, 0.0 }
  0xca   :  { %v369_v29 = vpop.f32.mrf.mxu0 }
  0xcb   :  { %v427_v31 = vadd.high.f32.bf16 %v369_v29, %v394_v24  ;;  %v116_v36 = vmax.f32 %v426_v30, 0.0 }
  0xcc   :  { %v104_v32 = vpop.f32.mrf.mxu0 }
  0xcd   :  { %v119_v34 = vmax.f32 %v427_v31, 0.0  ;;  %v428_v35 = vadd.high.f32.bf16 %v104_v32, %v399_v25 }
  0xcf   :  { %v117_v37 = vmax.f32 %v428_v35, 0.0  ;;  %v121_v38 = vpack.c.bf16 %v119_v34, %v118_v33 }
  0xd1   :  { %v120_v39 = vpack.c.bf16 %v117_v37, %v116_v36  ;;  %370 = vmatprep.subr.bf16.mxu1 %v121_v38 }
  0xd2   :  { %371 = vmatpush3.bf16.msra.mxu1 %v121_v38 }
  0xd3   :  { %372 = vmatprep.subr.bf16.mxu1 %v120_v39 }
  0xd6   :  { %373 = vmatpush3.bf16.msra.mxu1 %v120_v39 }
  0xd9   :  { %375 = vmatmul.mubr.msk.bf16.vlgmr.msra.gmra.mxu1 %vm164_vm2, %v416_v40 }
 0x199   :  { %v376_v44 = vpop.f32.mrf.mxu1 }
 0x19a   :  { %v429_v46 = vadd.low.f32.bf16 %v376_v44, %v405_v42 }
 0x19b   :  { %v205_v45 = vpop.f32.mrf.mxu1 }
 0x19c   :  { %v222_v50 = vmax.f32 %v429_v46, 0.0  ;;  %v431_v51 = vadd.low.f32.bf16 %v205_v45, %v410_v43 }
 0x19d   :  { %v377_v47 = vpop.f32.mrf.mxu1 }
 0x19e   :  { %v430_v48 = vadd.high.f32.bf16 %v377_v47, %v405_v42  ;;  %v220_v56 = vmax.f32 %v431_v51, 0.0 }
 0x19f   :  { %v208_v49 = vpop.f32.mrf.mxu1 }
 0x1a0   :  { %v223_v52 = vmax.f32 %v430_v48, 0.0  ;;  %v432_v53 = vadd.high.f32.bf16 %v208_v49, %v410_v43 }
 0x1a2   :  { %v225_v54 = vpack.c.bf16 %v223_v52, %v222_v50  ;;  %v221_v55 = vmax.f32 %v432_v53, 0.0 }
 0x1a4   :  { %379 = vmatpush3.bf16.msra.mxu0 %v225_v54  ;;  %v224_v57 = vpack.c.bf16 %v221_v55, %v220_v56 }
 0x1a5   :  { %380 = vmatprep.subr.bf16.mxu0 %v456_v41 }
 0x1a8   :  { %381 = vmatpush3.bf16.msra.mxu0 %v224_v57 }
 0x1ab   :  { %383 = vmatmul.mubr.msk.bf16.vlgmr.msra.gmra.mxu0 %vm164_vm2, %v226_v58 }
 0x26b   :  { %v271_v62 = vpop.f32.mrf.mxu0 }
 0x26c   :  { %v272_v63 = vadd.f32 %v271_v62, %v232_v61 }
 0x26d   :  { %v384_v0 = vpop.f32.mrf.mxu0 }
 0x26e   :  { %v280_v1 = vsel %vm279_vm4, %v272_v63, -inf }
 0x26f   :  { %v281_v2 = vrot.slane %v280_v1, 4  ;;  %v274_v3 = vpop.f32.mrf.mxu0 }
 0x271   :  { %v282_v4 = vmax.f32 %v280_v1, %v281_v2  ;;  %v385_v5 = vpop.f32.mrf.mxu0 }
 0x273   :  { %v283_v6 = vrot.slane %v282_v4, 2 }
 0x275   :  { %v284_v7 = vmax.f32 %v282_v4, %v283_v6 }
 0x277   :  { %v285_v8 = vrot.slane %v284_v7, 1 }
 0x279   :  { %v286_v9 = vmax.f32 %v284_v7, %v285_v8 }
 0x27b   :  { %v287_v10 = vsub.f32 %v272_v63, %v286_v9 }
 0x27d   :  { %v288_v11 = vmul.f32 1.442695, %v287_v10 }
 0x27f   :  { %417 = vpow2.f32 %v288_v11 }
 0x28c   :  { %v418_v12 = vpop.eup %417 }
 0x28d   :  { %v290_v13 = vsel %vm279_vm4, %v418_v12, 0.0 }
 0x28e   :  { %v291_v14 = vrot.slane %v290_v13, 4 }
 0x290   :  { %v292_v15 = vadd.f32 %v291_v14, %v290_v13 }
 0x292   :  { %v293_v16 = vrot.slane %v292_v15, 2 }
 0x294   :  { %v294_v17 = vadd.f32 %v293_v16, %v292_v15 }
 0x296   :  { %v295_v18 = vrot.slane %v294_v17, 1 }
 0x298   :  { %v296_v19 = vadd.f32 %v295_v18, %v294_v17 }
 0x29a   :  { %419 = vrcp.f32 %v296_v19 }
 0x2a7   :  { %v420_v20 = vpop.eup %419 }
 0x2a8   :  { %v298_v21 = vmul.f32 %v420_v20, %v290_v13 }
 0x2aa   :  { %v299_v22 = vmul.f32 1.442695, %v298_v21 }
 0x2ac   :  { %421 = vpow2.f32 %v299_v22 }
 0x2b9   :  { %v422_v23 = vpop.eup %421 }
 0x2ba   :  { %v301_v24 = vsel %vm279_vm4, %v422_v23, 0.0 }
 0x2bb   :  { %v302_v25 = vrot.slane %v301_v24, 4 }
 0x2bd   :  { %v303_v26 = vadd.f32 %v302_v25, %v301_v24 }
 0x2bf   :  { %v304_v27 = vrot.slane %v303_v26, 2 }
 0x2c1   :  { %v305_v28 = vadd.f32 %v304_v27, %v303_v26 }
 0x2c3   :  { %v306_v29 = vrot.slane %v305_v28, 1 }
 0x2c5   :  { %v307_v30 = vadd.f32 %v306_v29, %v305_v28 }
 0x2c7   :  { %423 = vrcp.f32 %v307_v30 }
 0x2d4   :  { %v424_v31 = vpop.eup %423 }
 0x2d5   :  { %v309_v32 = vmul.f32 %v424_v31, %v301_v24 }
 0x2d7   :  { %310 = vst [vmem:[#allocation2] sm:$0xff] %v309_v32 }
 0x2d8   :  { %444 = shalt.err (!%p441_p4)
}
 0x2d9   :  { %320 = dma.vmem_to_hbm [thread:$0]  %s318_s30, 128, %s518_s2, [#allocation3]  }
 0x2da   :  { %453 = dma.done.wait [#allocation3], 128  }
 0x2db   :  { %454 = vsyncadd [#allocation3], 4294967168 }
 0x2dc   :  { %324 = vsyncpa [#allocation3], 1 }

</bundles_post_ra>
